<compile_context>
chip_gen: v7x
topology: tpu7x:2x2x1
jax: 0.10.0
libtpu: 0.0.40
codegen_flags: <defaults>
</compile_context>

<pallas_src>
import functools

import jax
import jax.numpy as jnp
from jax.experimental import pallas as pl
from jax.experimental.pallas import tpu as pltpu

_MIB = 1024 * 1024


def _round_up(n, m):
    return ((n + m - 1) // m) * m


def _feature_align(dim):
    # 256-multiples feed the 2x256^2 MXUs on v6e/v7x; 128 keeps padding waste
    # low for small dims (and matches the 128x128 MXU on v5e).
    return 256 if dim > 128 else 128


# --------------------------------------------------------------------------- #
# Kernels
# --------------------------------------------------------------------------- #
def _ffn_resident_kernel(x_ref, w1_ref, b1_ref, w2_ref, b2_ref, o_ref):
    """grid = (row_tiles,).  W1/W2/b1/b2 use constant index_maps, so they stay
    resident in VMEM across the whole grid (DMA'd once per TensorCore)."""
    h = jnp.dot(x_ref[...], w1_ref[...], preferred_element_type=jnp.float32)
    h = jnp.maximum(h + b1_ref[...], 0.0)          # bias + ReLU in f32
    # TODO(synk): training-mode dropout (stateful PRNG mask) not implemented;
    # inference-mode dropout is the identity.
    y = jnp.dot(h.astype(w2_ref.dtype), w2_ref[...],
                preferred_element_type=jnp.float32)
    o_ref[...] = (y + b2_ref[...]).astype(o_ref.dtype)


def _ffn_chunked_kernel(x_ref, w1_ref, b1_ref, w2_ref, b2_ref, o_ref, acc_ref):
    """grid = (row_tiles, hidden_chunks).  Fallback when the weights do not fit
    the VMEM budget.  The hidden-chunk axis MUST remain the innermost grid axis
    (the accumulator init/finalize below relies on it)."""
    k = pl.program_id(1)

    @pl.when(k == 0)
    def _init():
        acc_ref[...] = jnp.zeros_like(acc_ref)

    h = jnp.dot(x_ref[...], w1_ref[...], preferred_element_type=jnp.float32)
    h = jnp.maximum(h + b1_ref[...], 0.0)
    acc_ref[...] += jnp.dot(h.astype(w2_ref.dtype), w2_ref[...],
                            preferred_element_type=jnp.float32)

    @pl.when(k == pl.num_programs(1) - 1)
    def _finalize():
        o_ref[...] = (acc_ref[...] + b2_ref[...]).astype(o_ref.dtype)


# --------------------------------------------------------------------------- #
# Jitted forward
# --------------------------------------------------------------------------- #
@functools.partial(jax.jit, static_argnames=("tm", "th", "vmem_limit_bytes"))
def _ffn_forward(x, w1_p, b1_p, w2_p, b2_p, *, tm, th, vmem_limit_bytes):
    B, T, idim = x.shape
    M = B * T
    out_dtype = x.dtype
    idim_p, hid_p = w1_p.shape

    M_p = _round_up(M, tm)
    x2d = x.reshape(M, idim)
    if (M_p, idim_p) != (M, idim):               # skip the pad copy if aligned
        x2d = jnp.pad(x2d, ((0, M_p - M), (0, idim_p - idim)))
    if x2d.dtype != w1_p.dtype:
        x2d = x2d.astype(w1_p.dtype)             # bf16 MXU operands

    cost = pl.CostEstimate(
        flops=4 * M_p * idim_p * hid_p,
        transcendentals=0,
        bytes_accessed=(x2d.size * x2d.dtype.itemsize
                        + (w1_p.size + w2_p.size) * w1_p.dtype.itemsize
                        + (b1_p.size + b2_p.size) * 4
                        + M_p * idim_p * jnp.dtype(out_dtype).itemsize),
    )

    if th >= hid_p:
        # ---- resident-weight path: weights live in VMEM, no accumulator ------
        out2d = pl.pallas_call(
            _ffn_resident_kernel,
            out_shape=jax.ShapeDtypeStruct((M_p, idim_p), out_dtype),
            grid_spec=pltpu.PrefetchScalarGridSpec(
                num_scalar_prefetch=0,
                grid=(M_p // tm,),
                in_specs=[
                    pl.BlockSpec((tm, idim_p),    lambda i: (i, 0)),   # x rows
                    pl.BlockSpec((idim_p, hid_p), lambda i: (0, 0)),   # W1
                    pl.BlockSpec((1, hid_p),      lambda i: (0, 0)),   # b1
                    pl.BlockSpec((hid_p, idim_p), lambda i: (0, 0)),   # W2
                    pl.BlockSpec((1, idim_p),     lambda i: (0, 0)),   # b2
                ],
                out_specs=pl.BlockSpec((tm, idim_p), lambda i: (i, 0)),
            ),
            compiler_params=pltpu.CompilerParams(
                dimension_semantics=("parallel",),
                vmem_limit_bytes=vmem_limit_bytes,
            ),
            cost_estimate=cost,
        )(x2d, w1_p, b1_p, w2_p, b2_p)
    else:
        # ---- chunked-reduction fallback (very large hidden dims) -------------
        # Note: with a "parallel" row axis both TensorCores re-stream the weight
        # chunks; residency (above) is strongly preferred when it fits.
        # (pipeline_mode=pl.Buffered(3) on the weight chunks could hide a bit
        #  more DMA latency; default double-buffering kept for portability.)
        out2d = pl.pallas_call(
            _ffn_chunked_kernel,
            out_shape=jax.ShapeDtypeStruct((M_p, idim_p), out_dtype),
            grid_spec=pltpu.PrefetchScalarGridSpec(
                num_scalar_prefetch=0,
                grid=(M_p // tm, hid_p // th),
                in_specs=[
                    pl.BlockSpec((tm, idim_p), lambda i, k: (i, 0)),  # x rows
                    pl.BlockSpec((idim_p, th), lambda i, k: (0, k)),  # W1 chunk
                    pl.BlockSpec((1, th),      lambda i, k: (0, k)),  # b1 chunk
                    pl.BlockSpec((th, idim_p), lambda i, k: (k, 0)),  # W2 chunk
                    pl.BlockSpec((1, idim_p),  lambda i, k: (0, 0)),  # b2
                ],
                out_specs=pl.BlockSpec((tm, idim_p), lambda i, k: (i, 0)),
                scratch_shapes=[pltpu.VMEM((tm, idim_p), jnp.float32)],
            ),
            compiler_params=pltpu.CompilerParams(
                dimension_semantics=("parallel", "arbitrary"),
                vmem_limit_bytes=vmem_limit_bytes,
            ),
            cost_estimate=cost,
        )(x2d, w1_p, b1_p, w2_p, b2_p)

    if (M_p, idim_p) != (M, idim):
        out2d = out2d[:M, :idim]
    return out2d.reshape(B, T, idim)


# --------------------------------------------------------------------------- #
# Module wrapper: pads/casts parameters once, picks tiles + VMEM limit once.
# --------------------------------------------------------------------------- #
class PositionwiseFeedForwardTPU:
    """Inference-mode PositionwiseFeedForward.

    Weights follow the (in, out) layout, i.e. already transposed relative to
    torch nn.Linear's (out, in) convention, so the kernel computes x @ W.

    vmem_budget_bytes defaults to 48 MiB (safe on a v7x TensorCore's 64 MiB);
    raise it (e.g. 96 MiB) on v5e/v6e which have 128 MiB of VMEM.
    """

    def __init__(self, w1, b1, w2, b2, *, dropout_rate=0.0,
                 tm=512, hidden_chunk=None,
                 compute_dtype=jnp.bfloat16,
                 vmem_budget_bytes=48 * _MIB):
        del dropout_rate  # eval-mode dropout is the identity
        idim, hidden = w1.shape
        assert w2.shape == (hidden, idim)
        self.idim, self.hidden, self.tm = int(idim), int(hidden), int(tm)

        w_dtype = jnp.dtype(compute_dtype if compute_dtype is not None
                            else w1.dtype)
        wb = w_dtype.itemsize

        idim_p = _round_up(idim, _feature_align(idim))
        hid_align = _feature_align(hidden)
        hid_full = _round_up(hidden, hid_align)

        # VMEM footprint models (conservative: weights & I/O counted x2 for
        # pipeline double-buffering; intermediates/accumulator in f32).
        def resident_fp(hid_p):
            weights = 2 * 2 * idim_p * hid_p * wb + 2 * (hid_p + idim_p) * 4
            io = 2 * tm * idim_p * wb + 2 * tm * idim_p * 4
            return weights + io + tm * hid_p * 4        # + f32 hidden activation

        def chunked_fp(th_):
            weights = 2 * 2 * idim_p * th_ * wb + 2 * (th_ + idim_p) * 4
            io = 2 * tm * idim_p * wb + 2 * tm * idim_p * 4
            return weights + io + tm * th_ * 4 + tm * idim_p * 4   # + f32 acc

        if hidden_chunk is not None:
            th = max(128, _round_up(int(hidden_chunk), 128))
            hid_p = _round_up(hidden, th)
            th = min(th, hid_p)
            footprint = resident_fp(hid_p) if th >= hid_p else chunked_fp(th)
        elif resident_fp(hid_full) <= vmem_budget_bytes:
            th, hid_p = hid_full, hid_full               # resident-weight path
            footprint = resident_fp(hid_full)
        else:
            th = hid_align                               # chunked fallback
            c = hid_align
            while c < hid_full:
                if chunked_fp(c) <= vmem_budget_bytes and hid_full % c == 0:
                    th = c
                c += hid_align
            hid_p = _round_up(hidden, th)
            footprint = chunked_fp(th)

        # Right-size the scoped VMEM limit: footprint + headroom, never the
        # full physical VMEM of a v7x TensorCore (64 MiB) by default.
        cap = max(56 * _MIB, vmem_budget_bytes + 8 * _MIB)
        self.vmem_limit_bytes = int(
            min(max(footprint + footprint // 4 + 4 * _MIB, 16 * _MIB), cap))
        self.th = int(th)

        # Pad + cast parameters ONCE (not on every jitted forward call).
        self.w1_p = jnp.pad(
            w1, ((0, idim_p - idim), (0, hid_p - hidden))).astype(w_dtype)
        self.w2_p = jnp.pad(
            w2, ((0, hid_p - hidden), (0, idim_p - idim))).astype(w_dtype)
        self.b1_p = jnp.pad(b1, (0, hid_p - hidden)
                            ).astype(jnp.float32).reshape(1, hid_p)
        self.b2_p = jnp.pad(b2, (0, idim_p - idim)
                            ).astype(jnp.float32).reshape(1, idim_p)

    def __call__(self, x):
        B, T, idim = x.shape
        assert idim == self.idim
        # Clamp the row tile for small / decode-sized calls so 16 tokens are
        # not padded out to tm rows of wasted MXU work.
        tm_eff = min(self.tm, _round_up(B * T, 128))
        return _ffn_forward(x, self.w1_p, self.b1_p, self.w2_p, self.b2_p,
                            tm=tm_eff, th=self.th,
                            vmem_limit_bytes=self.vmem_limit_bytes)


def _init_params(key, idim, hidden, dtype=jnp.float32):
    """Deterministic nn.Linear-style init (uniform +/- 1/sqrt(fan_in)).

    Weights are stored already transposed relative to torch's (out, in)
    convention, i.e. shaped (in, out) so the kernel computes x @ W directly.
    """
    k1, k2, k3, k4 = jax.random.split(key, 4)
    lim1 = 1.0 / jnp.sqrt(idim)
    lim2 = 1.0 / jnp.sqrt(hidden)
    w1 = jax.random.uniform(k1, (idim, hidden), dtype, -lim1, lim1)
    b1 = jax.random.uniform(k2, (hidden,), dtype, -lim1, lim1)
    w2 = jax.random.uniform(k3, (hidden, idim), dtype, -lim2, lim2)
    b2 = jax.random.uniform(k4, (idim,), dtype, -lim2, lim2)
    return w1, b1, w2, b2


if __name__ == "__main__":
    key = jax.random.PRNGKey(0)
    kx, kp, kp2 = jax.random.split(key, 3)

    B, T, idim, hidden = 2, 8, 32, 64
    x = jax.random.normal(kx, (B, T, idim), jnp.float32)
    w1, b1, w2, b2 = _init_params(kp, idim, hidden)

    # Exact-f32 reference (dropout = identity in eval mode).
    ref = jnp.maximum(
        jnp.dot(x, w1, precision=jax.lax.Precision.HIGHEST) + b1, 0.0)
    ref = jnp.dot(ref, w2, precision=jax.lax.Precision.HIGHEST) + b2

    # 1) Default path: bf16 MXU operands, f32 accumulation, resident weights.
    #    Tolerance is consistent with bf16 operand rounding.
    ffn = PositionwiseFeedForwardTPU(w1, b1, w2, b2, dropout_rate=0.1)
    out = jax.block_until_ready(ffn(x))
    assert out.shape == (B, T, idim) and out.dtype == x.dtype
    assert jnp.allclose(out, ref, atol=5e-2, rtol=5e-2), "bf16 path mismatch"

    # 2) f32 compute path (tolerance still covers the TPU default f32-matmul
    #    precision, which may use bf16 passes).
    ffn_f32 = PositionwiseFeedForwardTPU(w1, b1, w2, b2,
                                         compute_dtype=jnp.float32)
    out_f32 = jax.block_until_ready(ffn_f32(x))
    assert jnp.allclose(out_f32, ref, atol=5e-2, rtol=5e-2), "f32 path mismatch"

    # 3) Chunked-reduction fallback (forced hidden chunk < padded hidden).
    idim2, hidden2 = 32, 256
    x2 = jax.random.normal(kx, (B, T, idim2), jnp.float32)
    w1c, b1c, w2c, b2c = _init_params(kp2, idim2, hidden2)
    refc = jnp.maximum(
        jnp.dot(x2, w1c, precision=jax.lax.Precision.HIGHEST) + b1c, 0.0)
    refc = jnp.dot(refc, w2c, precision=jax.lax.Precision.HIGHEST) + b2c
    ffn_chunk = PositionwiseFeedForwardTPU(w1c, b1c, w2c, b2c,
                                           hidden_chunk=128,
                                           compute_dtype=jnp.float32)
    out_c = jax.block_until_ready(ffn_chunk(x2))
    assert jnp.allclose(out_c, refc, atol=5e-2, rtol=5e-2), \
        "chunked path mismatch"

    print("KERNEL_OK")
</pallas_src>

<mosaic_0001>
module attributes {stable_mosaic.version = 11 : i64} {
  func.func @_ffn_resident_kernel(%arg0: i32, %arg1: memref<128x128xbf16, #tpu.memory_space<vmem>>, %arg2: memref<128x128xbf16, #tpu.memory_space<vmem>>, %arg3: memref<1x128xf32, #tpu.memory_space<vmem>>, %arg4: memref<128x128xbf16, #tpu.memory_space<vmem>>, %arg5: memref<1x128xf32, #tpu.memory_space<vmem>>, %arg6: memref<128x128xf32, #tpu.memory_space<vmem>>) attributes {dimension_semantics = [#tpu.dimension_semantics<parallel>], iteration_bounds = array<i64: 1>, scalar_prefetch = 0 : i64, scratch_operands = 0 : i64, tpu.core_type = #tpu.core_type<tc>, window_params = [{transform_indices = @transform_0, window_bounds = array<i64: 128, 128>}, {pipeline_mode = #tpu.pipeline_mode<synchronous>, transform_indices = @transform_1, window_bounds = array<i64: 128, 128>}, {pipeline_mode = #tpu.pipeline_mode<synchronous>, transform_indices = @transform_2, window_bounds = array<i64: 1, 128>}, {pipeline_mode = #tpu.pipeline_mode<synchronous>, transform_indices = @transform_3, window_bounds = array<i64: 128, 128>}, {pipeline_mode = #tpu.pipeline_mode<synchronous>, transform_indices = @transform_4, window_bounds = array<i64: 1, 128>}, {transform_indices = @transform_5, window_bounds = array<i64: 128, 128>}]} {
    %c0 = arith.constant 0 : index
    %c0_0 = arith.constant 0 : index
    %0 = vector.load %arg1[%c0, %c0_0] : memref<128x128xbf16, #tpu.memory_space<vmem>>, vector<128x128xbf16>
    %c0_1 = arith.constant 0 : index
    %c0_2 = arith.constant 0 : index
    %1 = vector.load %arg2[%c0_1, %c0_2] : memref<128x128xbf16, #tpu.memory_space<vmem>>, vector<128x128xbf16>
    %cst = arith.constant dense<0.000000e+00> : vector<128x128xf32>
    %2 = tpu.matmul %0, %1, %cst {dimension_numbers = #tpu.dot_dimension_numbers<[1], [0], [0], [1], [0, 0, 1, 1], [], []>} : vector<128x128xbf16>, vector<128x128xbf16>, vector<128x128xf32> -> vector<128x128xf32>
    %c0_3 = arith.constant 0 : index
    %c0_4 = arith.constant 0 : index
    %3 = vector.load %arg3[%c0_3, %c0_4] : memref<1x128xf32, #tpu.memory_space<vmem>>, vector<1x128xf32>
    %4 = vector.broadcast %3 : vector<1x128xf32> to vector<128x128xf32>
    %5 = arith.addf %2, %4 : vector<128x128xf32>
    %cst_5 = arith.constant 0.000000e+00 : f32
    %6 = vector.broadcast %cst_5 : f32 to vector<128x128xf32>
    %7 = arith.maximumf %5, %6 : vector<128x128xf32>
    %8 = arith.truncf %7 : vector<128x128xf32> to vector<128x128xbf16>
    %c0_6 = arith.constant 0 : index
    %c0_7 = arith.constant 0 : index
    %9 = vector.load %arg4[%c0_6, %c0_7] : memref<128x128xbf16, #tpu.memory_space<vmem>>, vector<128x128xbf16>
    %cst_8 = arith.constant dense<0.000000e+00> : vector<128x128xf32>
    %10 = tpu.matmul %8, %9, %cst_8 {dimension_numbers = #tpu.dot_dimension_numbers<[1], [0], [0], [1], [0, 0, 1, 1], [], []>} : vector<128x128xbf16>, vector<128x128xbf16>, vector<128x128xf32> -> vector<128x128xf32>
    %c0_9 = arith.constant 0 : index
    %c0_10 = arith.constant 0 : index
    %11 = vector.load %arg5[%c0_9, %c0_10] : memref<1x128xf32, #tpu.memory_space<vmem>>, vector<1x128xf32>
    %12 = vector.broadcast %11 : vector<1x128xf32> to vector<128x128xf32>
    %13 = arith.addf %10, %12 : vector<128x128xf32>
    %c0_11 = arith.constant 0 : index
    %c0_12 = arith.constant 0 : index
    %14 = vector.load %arg6[%c0_11, %c0_12] : memref<128x128xf32, #tpu.memory_space<vmem>>, vector<128x128xf32>
    tpu.vector_store %arg6[%c0_11, %c0_12], %13 {strides = array<i32>} : memref<128x128xf32, #tpu.memory_space<vmem>>, vector<128x128xf32>,
    return
  }
  func.func @transform_0(%arg0: i32) -> (i32, i32) {
    %c0_i32 = arith.constant 0 : i32
    %c0_i32_0 = arith.constant 0 : i32
    return %arg0, %c0_i32 : i32, i32
  }
  func.func @transform_1(%arg0: i32) -> (i32, i32) {
    %c0_i32 = arith.constant 0 : i32
    %c0_i32_0 = arith.constant 0 : i32
    %c0_i32_1 = arith.constant 0 : i32
    return %c0_i32, %c0_i32_0 : i32, i32
  }
  func.func @transform_2(%arg0: i32) -> (i32, i32) {
    %c0_i32 = arith.constant 0 : i32
    %c0_i32_0 = arith.constant 0 : i32
    %c0_i32_1 = arith.constant 0 : i32
    return %c0_i32, %c0_i32_0 : i32, i32
  }
  func.func @transform_3(%arg0: i32) -> (i32, i32) {
    %c0_i32 = arith.constant 0 : i32
    %c0_i32_0 = arith.constant 0 : i32
    %c0_i32_1 = arith.constant 0 : i32
    return %c0_i32, %c0_i32_0 : i32, i32
  }
  func.func @transform_4(%arg0: i32) -> (i32, i32) {
    %c0_i32 = arith.constant 0 : i32
    %c0_i32_0 = arith.constant 0 : i32
    %c0_i32_1 = arith.constant 0 : i32
    return %c0_i32, %c0_i32_0 : i32, i32
  }
  func.func @transform_5(%arg0: i32) -> (i32, i32) {
    %c0_i32 = arith.constant 0 : i32
    %c0_i32_0 = arith.constant 0 : i32
    return %arg0, %c0_i32 : i32, i32
  }
}

</mosaic_0001>

<bundles_post_ra>
// kernel: _ffn_forward.1
= control target key start
LH: loop header
LB: loop body
LE: loop exit
PB: predicated region body
PF: predicated region fallthrough
CT: control target
= control target key end

     0   :  { %10 = vsyncpa [#allocation3], 0  ;;  %s653_s18 = smov [#allocation2]   ;;  %s800_s0 = inlined_call_operand.vmem [shape: bf16[128,128], index: 0, kind: input, shape index: {}]   ;;  %s801_s1 = inlined_call_operand.vmem [shape: bf16[128,128], index: 1, kind: input, shape index: {}]   ;;  %s802_s2 = inlined_call_operand.vmem [shape: f32[1,128], index: 2, kind: input, shape index: {}]   ;;  %s803_s3 = inlined_call_operand.hbm [shape: bf16[128,128], index: 3, kind: input, shape index: {}]   ;;  %s804_s4 = inlined_call_operand.vmem [shape: f32[1,128], index: 4, kind: input, shape index: {}]   ;;  %s805_s5 = inlined_call_operand.vmem [shape: f32[128,128], index: 5, kind: output, shape index: {}]  }
   0x1   :  { %s22_s19 = sshll.u32 %s653_s18, 4  ;;  %s629_s22 = scalar_lea.hbm %s803_s3, 1024  ;;  %s23_s19 = int_to_ptr.vmem [resolvable:$true] %s22_s19 }
   0x2   :  { %p630_p0 = scmp.ne.s32.totalorder %s803_s3, %s629_s22  ;;  %p633_p1 = scmp.lt.u32.totalorder %s629_s22, %s803_s3 }
   0x4   :  { %p635_p2 = pnand %p633_p1, %p630_p0 }
   0x6   :  { %638 = shalt.err (!%p635_p2)
}
   0x7   :  { %s639_s27 = scalar_lea.vmem %s23_s19, 1024  ;;  %p644_p4 = scmp.lt.s32.totalorder %s23_s19, %s23_s19 }
   0x8   :  { %p640_p3 = scmp.ne.s32.totalorder %s23_s19, %s639_s27  ;;  %p645_p5 = scmp.lt.s32.totalorder %s639_s27, %s639_s27 }
   0xa   :  { %p646_p6 = por %p645_p5, %p644_p4 }
   0xc   :  { %p647_p7 = pnand %p646_p6, %p640_p3 }
   0xe   :  { %650 = shalt.err (!%p647_p7)
}
   0xf   :  { %s654_s28 = smov 64   ;;  %s655_s29 = smov 4  }
  0x10   :  { %28 = dma.hbm_to_vmem [thread:$0]  %s803_s3, 1024, %s23_s19, [#allocation3], %s654_s28, %s654_s28, %s655_s29  }
  0x11   :  { %651 = dma.done.wait [#allocation3], 1024  }
  0x12   :  { %652 = vsyncadd [#allocation3], 4294966272  ;;  %v605_v0 = vld [vmem:[%s801_s1] sm:$0xff]   ;;  %v606_v1 = vld [vmem:[%s801_s1 + $0x8] sm:$0xff]  }
  0x13   :  { %538 = vmatprep.subr.bf16.mxu0 %v605_v0  ;;  %v607_v2 = vld [vmem:[%s801_s1 + $0x10] sm:$0xff]   ;;  %v608_v3 = vld [vmem:[%s801_s1 + $0x18] sm:$0xff]   ;;  %v613_v4 = vld [vmem:[%s800_s0] sm:$0xff]  }
  0x14   :  { %539 = vmatpush3.bf16.msra.mxu0 %v605_v0  ;;  %554 = vmatprep.mubr.bf16.mxu0 %v613_v4  ;;  %v609_v5 = vld [vmem:[%s801_s1 + $0x20] sm:$0xff]   ;;  %v610_v6 = vld [vmem:[%s801_s1 + $0x28] sm:$0xff]   ;;  %v611_v9 = vld [vmem:[%s801_s1 + $0x30] sm:$0xff]  }
  0x15   :  { %540 = vmatprep.subr.bf16.mxu0 %v606_v1  ;;  %v621_v7 = vld [vmem:[#allocation2] sm:$0xff]   ;;  %v622_v8 = vld [vmem:[#allocation2 + $0x8] sm:$0xff]   ;;  %v623_v10 = vld [vmem:[#allocation2 + $0x10] sm:$0xff]  }
  0x16   :  { %570 = vmatprep.subr.bf16.mxu1 %v621_v7  ;;  %v612_v11 = vld [vmem:[%s801_s1 + $0x38] sm:$0xff]   ;;  %v625_v13 = vld [vmem:[#allocation2 + $0x20] sm:$0xff]   ;;  %v614_v14 = vld [vmem:[%s800_s0 + $0x8] sm:$0xff]  }
  0x17   :  { %571 = vmatpush3.bf16.msra.mxu1 %v621_v7  ;;  %v624_v12 = vld [vmem:[#allocation2 + $0x18] sm:$0xff]   ;;  %v615_v15 = vld [vmem:[%s800_s0 + $0x10] sm:$0xff]   ;;  %v626_v16 = vld [vmem:[#allocation2 + $0x28] sm:$0xff]  }
  0x18   :  { %541 = vmatpush3.bf16.msra.mxu0 %v606_v1  ;;  %572 = vmatprep.subr.bf16.mxu1 %v622_v8  ;;  %v616_v17 = vld [vmem:[%s800_s0 + $0x18] sm:$0xff]   ;;  %v617_v18 = vld [vmem:[%s800_s0 + $0x20] sm:$0xff]   ;;  %v618_v19 = vld [vmem:[%s800_s0 + $0x28] sm:$0xff]  }
  0x19   :  { %542 = vmatprep.subr.bf16.mxu0 %v607_v2  ;;  %v619_v20 = vld [vmem:[%s800_s0 + $0x30] sm:$0xff]   ;;  %v620_v21 = vld [vmem:[%s800_s0 + $0x38] sm:$0xff]   ;;  %v480_v24 = vld [vmem:[%s802_s2] ss:$0 sm:$0xff] }
  0x1a   :  { %v627_v22 = vld [vmem:[#allocation2 + $0x30] sm:$0xff]   ;;  %v628_v23 = vld [vmem:[#allocation2 + $0x38] sm:$0xff]  }
  0x1b   :  { %573 = vmatpush3.bf16.msra.mxu1 %v622_v8 }
  0x1c   :  { %543 = vmatpush3.bf16.msra.mxu0 %v607_v2  ;;  %574 = vmatprep.subr.bf16.mxu1 %v623_v10 }
  0x1d   :  { %544 = vmatprep.subr.bf16.mxu0 %v608_v3 }
  0x1f   :  { %575 = vmatpush3.bf16.msra.mxu1 %v623_v10 }
  0x20   :  { %545 = vmatpush3.bf16.msra.mxu0 %v608_v3  ;;  %576 = vmatprep.subr.bf16.mxu1 %v624_v12 }
  0x21   :  { %546 = vmatprep.subr.bf16.mxu0 %v609_v5 }
  0x23   :  { %577 = vmatpush3.bf16.msra.mxu1 %v624_v12 }
  0x24   :  { %547 = vmatpush3.bf16.msra.mxu0 %v609_v5  ;;  %578 = vmatprep.subr.bf16.mxu1 %v625_v13 }
  0x25   :  { %548 = vmatprep.subr.bf16.mxu0 %v610_v6 }
  0x27   :  { %579 = vmatpush3.bf16.msra.mxu1 %v625_v13 }
  0x28   :  { %549 = vmatpush3.bf16.msra.mxu0 %v610_v6  ;;  %580 = vmatprep.subr.bf16.mxu1 %v626_v16 }
  0x29   :  { %550 = vmatprep.subr.bf16.mxu0 %v611_v9 }
  0x2b   :  { %581 = vmatpush3.bf16.msra.mxu1 %v626_v16 }
  0x2c   :  { %551 = vmatpush3.bf16.msra.mxu0 %v611_v9  ;;  %582 = vmatprep.subr.bf16.mxu1 %v627_v22 }
  0x2d   :  { %552 = vmatprep.subr.bf16.mxu0 %v612_v11 }
  0x2f   :  { %583 = vmatpush3.bf16.msra.mxu1 %v627_v22 }
  0x30   :  { %553 = vmatpush3.bf16.msra.mxu0 %v612_v11  ;;  %584 = vmatprep.subr.bf16.mxu1 %v628_v23 }
  0x33   :  { %555 = vmatmul.mubr.bf16.vlgmr.msra.gmra.mrb[0].mxu0 %v614_v14  ;;  %585 = vmatpush3.bf16.msra.mxu1 %v628_v23 }
  0x34   :  { %558 = vmatprep.mubr.bf16.mxu0 %v615_v15 }
  0x3b   :  { %559 = vmatmul.mubr.bf16.gmra.mrb[4].mxu0 %v616_v17  ;;  %v497_v17 = vld [vmem:[%s804_s4] ss:$0 sm:$0xff] }
  0x3c   :  { %562 = vmatprep.mubr.bf16.mxu0 %v617_v18 }
  0x43   :  { %563 = vmatmul.mubr.bf16.gmra.mrb[8].mxu0 %v618_v19 }
  0x44   :  { %566 = vmatprep.mubr.bf16.mxu0 %v619_v20 }
  0x4b   :  { %567 = vmatmul.mubr.bf16.gmra.mrb[12].mxu0 %v620_v21 }
 0x106   :  { %v556_v25 = vpop.f32.mrb[0].mxu0 }
 0x107   :  { %v213_v26 = vadd.f32 %v556_v25, %v480_v24  ;;  %v204_v27 = vpop.f32.mrb[1].mxu0 }
 0x108   :  { %v205_v28 = vadd.f32 %v480_v24, %v204_v27  ;;  %v557_v29 = vpop.f32.mrb[2].mxu0 }
 0x109   :  { %v216_v30 = vadd.f32 %v557_v29, %v480_v24  ;;  %v207_v31 = vpop.f32.mrb[3].mxu0  ;;  %v269_v33 = vmax.f32 %v213_v26, 0.0 }
 0x10a   :  { %v208_v32 = vadd.f32 %v480_v24, %v207_v31  ;;  %v267_v35 = vmax.f32 %v205_v28, 0.0 }
 0x10b   :  { %v270_v34 = vmax.f32 %v216_v30, 0.0 }
 0x10c   :  { %v268_v36 = vmax.f32 %v208_v32, 0.0 }
 0x10d   :  { %v284_v37 = vpack.c.bf16 %v270_v34, %v269_v33 }
 0x10e   :  { %v560_v38 = vpop.f32.mrb[4].mxu0  ;;  %v283_v39 = vpack.c.bf16 %v268_v36, %v267_v35 }
 0x10f   :  { %v229_v40 = vadd.f32 %v560_v38, %v480_v24  ;;  %v220_v41 = vpop.f32.mrb[5].mxu0 }
 0x110   :  { %v221_v42 = vadd.f32 %v480_v24, %v220_v41  ;;  %v561_v43 = vpop.f32.mrb[6].mxu0  ;;  %586 = vmatprep.mubr.bf16.mxu1 %v283_v39 }
 0x111   :  { %v232_v44 = vadd.f32 %v561_v43, %v480_v24  ;;  %v223_v45 = vpop.f32.mrb[7].mxu0  ;;  %587 = vmatmul.mubr.bf16.vlgmr.msra.gmra.mrb[0].mxu1 %v284_v37  ;;  %v273_v47 = vmax.f32 %v229_v40, 0.0 }
 0x112   :  { %v224_v46 = vadd.f32 %v480_v24, %v223_v45  ;;  %v271_v49 = vmax.f32 %v221_v42, 0.0 }
 0x113   :  { %v274_v48 = vmax.f32 %v232_v44, 0.0 }
 0x114   :  { %v272_v50 = vmax.f32 %v224_v46, 0.0 }
 0x115   :  { %v286_v51 = vpack.c.bf16 %v274_v48, %v273_v47 }
 0x116   :  { %v285_v52 = vpack.c.bf16 %v272_v50, %v271_v49  ;;  %v564_v53 = vpop.f32.mrb[8].mxu0 }
 0x117   :  { %v245_v54 = vadd.f32 %v564_v53, %v480_v24  ;;  %v236_v55 = vpop.f32.mrb[9].mxu0 }
 0x118   :  { %v237_v56 = vadd.f32 %v480_v24, %v236_v55  ;;  %v565_v57 = vpop.f32.mrb[10].mxu0  ;;  %590 = vmatprep.mubr.bf16.mxu1 %v285_v52 }
 0x119   :  { %v248_v58 = vadd.f32 %v565_v57, %v480_v24  ;;  %v239_v59 = vpop.f32.mrb[11].mxu0  ;;  %591 = vmatmul.mubr.bf16.gmra.mrb[4].mxu1 %v286_v51  ;;  %v277_v61 = vmax.f32 %v245_v54, 0.0 }
 0x11a   :  { %v240_v60 = vadd.f32 %v480_v24, %v239_v59  ;;  %v275_v63 = vmax.f32 %v237_v56, 0.0 }
 0x11b   :  { %v278_v62 = vmax.f32 %v248_v58, 0.0 }
 0x11c   :  { %v276_v0 = vmax.f32 %v240_v60, 0.0 }
 0x11d   :  { %v288_v1 = vpack.c.bf16 %v278_v62, %v277_v61 }
 0x11e   :  { %v287_v2 = vpack.c.bf16 %v276_v0, %v275_v63  ;;  %v568_v3 = vpop.f32.mrb[12].mxu0 }
 0x11f   :  { %v261_v4 = vadd.f32 %v568_v3, %v480_v24  ;;  %v252_v5 = vpop.f32.mrb[13].mxu0 }
 0x120   :  { %v253_v6 = vadd.f32 %v480_v24, %v252_v5  ;;  %v569_v7 = vpop.f32.mrb[14].mxu0  ;;  %594 = vmatprep.mubr.bf16.mxu1 %v287_v2 }
 0x121   :  { %v264_v8 = vadd.f32 %v569_v7, %v480_v24  ;;  %v255_v9 = vpop.f32.mrb[15].mxu0  ;;  %595 = vmatmul.mubr.bf16.gmra.mrb[8].mxu1 %v288_v1  ;;  %v281_v11 = vmax.f32 %v261_v4, 0.0 }
 0x122   :  { %v256_v10 = vadd.f32 %v480_v24, %v255_v9  ;;  %v279_v13 = vmax.f32 %v253_v6, 0.0 }
 0x123   :  { %v282_v12 = vmax.f32 %v264_v8, 0.0 }
 0x124   :  { %v280_v14 = vmax.f32 %v256_v10, 0.0 }
 0x125   :  { %v290_v15 = vpack.c.bf16 %v282_v12, %v281_v11 }
 0x126   :  { %v289_v16 = vpack.c.bf16 %v280_v14, %v279_v13 }
 0x128   :  { %598 = vmatprep.mubr.bf16.mxu1 %v289_v16 }
 0x129   :  { %599 = vmatmul.mubr.bf16.gmra.mrb[12].mxu1 %v290_v15 }
 0x1e4   :  { %v588_v18 = vpop.f32.mrb[0].mxu1 }
 0x1e5   :  { %v405_v19 = vadd.f32 %v588_v18, %v497_v17  ;;  %v396_v20 = vpop.f32.mrb[1].mxu1 }
 0x1e6   :  { %v397_v21 = vadd.f32 %v497_v17, %v396_v20  ;;  %v589_v22 = vpop.f32.mrb[2].mxu1 }
 0x1e7   :  { %461 = vst [vmem:[%s805_s5 + $0x10] sm:$0xff] %v405_v19  ;;  %v408_v23 = vadd.f32 %v589_v22, %v497_v17  ;;  %v399_v24 = vpop.f32.mrb[3].mxu1 }
 0x1e8   :  { %459 = vst [vmem:[%s805_s5] sm:$0xff] %v397_v21  ;;  %v400_v25 = vadd.f32 %v497_v17, %v399_v24 }
 0x1e9   :  { %462 = vst [vmem:[%s805_s5 + $0x18] sm:$0xff] %v408_v23 }
 0x1ea   :  { %460 = vst [vmem:[%s805_s5 + $0x8] sm:$0xff] %v400_v25 }
 0x1ec   :  { %v592_v26 = vpop.f32.mrb[4].mxu1 }
 0x1ed   :  { %v421_v27 = vadd.f32 %v592_v26, %v497_v17  ;;  %v412_v28 = vpop.f32.mrb[5].mxu1 }
 0x1ee   :  { %v413_v29 = vadd.f32 %v497_v17, %v412_v28  ;;  %v593_v30 = vpop.f32.mrb[6].mxu1 }
 0x1ef   :  { %465 = vst [vmem:[%s805_s5 + $0x30] sm:$0xff] %v421_v27  ;;  %v424_v31 = vadd.f32 %v593_v30, %v497_v17  ;;  %v415_v32 = vpop.f32.mrb[7].mxu1 }
 0x1f0   :  { %463 = vst [vmem:[%s805_s5 + $0x20] sm:$0xff] %v413_v29  ;;  %v416_v33 = vadd.f32 %v497_v17, %v415_v32 }
 0x1f1   :  { %466 = vst [vmem:[%s805_s5 + $0x38] sm:$0xff] %v424_v31 }
 0x1f2   :  { %464 = vst [vmem:[%s805_s5 + $0x28] sm:$0xff] %v416_v33 }
 0x1f4   :  { %v596_v34 = vpop.f32.mrb[8].mxu1 }
 0x1f5   :  { %v437_v35 = vadd.f32 %v596_v34, %v497_v17  ;;  %v428_v36 = vpop.f32.mrb[9].mxu1 }
 0x1f6   :  { %v429_v37 = vadd.f32 %v497_v17, %v428_v36  ;;  %v597_v38 = vpop.f32.mrb[10].mxu1 }
 0x1f7   :  { %469 = vst [vmem:[%s805_s5 + $0x50] sm:$0xff] %v437_v35  ;;  %v440_v39 = vadd.f32 %v597_v38, %v497_v17  ;;  %v431_v40 = vpop.f32.mrb[11].mxu1 }
 0x1f8   :  { %467 = vst [vmem:[%s805_s5 + $0x40] sm:$0xff] %v429_v37  ;;  %v432_v41 = vadd.f32 %v497_v17, %v431_v40 }
 0x1f9   :  { %470 = vst [vmem:[%s805_s5 + $0x58] sm:$0xff] %v440_v39 }
 0x1fa   :  { %468 = vst [vmem:[%s805_s5 + $0x48] sm:$0xff] %v432_v41 }
 0x1fc   :  { %v600_v42 = vpop.f32.mrb[12].mxu1 }
 0x1fd   :  { %v453_v43 = vadd.f32 %v600_v42, %v497_v17  ;;  %v444_v44 = vpop.f32.mrb[13].mxu1 }
 0x1fe   :  { %v445_v45 = vadd.f32 %v497_v17, %v444_v44  ;;  %v601_v46 = vpop.f32.mrb[14].mxu1 }
 0x1ff   :  { %473 = vst [vmem:[%s805_s5 + $0x70] sm:$0xff] %v453_v43  ;;  %v456_v47 = vadd.f32 %v601_v46, %v497_v17  ;;  %v447_v48 = vpop.f32.mrb[15].mxu1 }
 0x200   :  { %471 = vst [vmem:[%s805_s5 + $0x60] sm:$0xff] %v445_v45  ;;  %v448_v49 = vadd.f32 %v497_v17, %v447_v48 }
 0x201   :  { %474 = vst [vmem:[%s805_s5 + $0x78] sm:$0xff] %v456_v47 }
 0x202   :  { %472 = vst [vmem:[%s805_s5 + $0x68] sm:$0xff] %v448_v49 }
 0x203   :  { %479 = vsyncpa [#allocation3], 1 }

</bundles_post_ra>
